<compile_context>
chip_gen: v5e
topology: v5e:2x2
jax: 0.10.0
libtpu: 0.0.40
codegen_flags: <defaults>
</compile_context>

<pallas_src>
import jax
import jax.numpy as jnp
from jax.experimental import pallas as pl
from jax.experimental.pallas import tpu as pltpu


_VMEM_BUFFER_BUDGET = 16 * 1024 * 1024   # bytes for all pipelined (in+out) buffers
_VMEM_LIMIT_BYTES = 32 * 1024 * 1024     # scoped-VMEM cap: safe on v5e/v6e/v7x
_SMALL_INPUT_ELEMS = 1 << 17             # below this, plain-JAX fallback wins


def _scale_kernel(scale_ref, x_ref, o_ref):
    # scale_ref: (1,) f32 resident in SMEM for the whole grid.
    # x_ref:     (TM, LANES) VMEM tile in the input's *native* dtype.
    # o_ref:     (TM, LANES) VMEM tile in the promoted output dtype.
    # Widening (bf16/int -> f32) happens here, free on the VPU.
    o_ref[...] = (x_ref[...] * scale_ref[0]).astype(o_ref.dtype)


def _sublane_multiple(*dtypes):
    """Row-tile multiple so (sublane, 128) packing holds for every dtype used."""
    min_itemsize = min(jnp.dtype(d).itemsize for d in dtypes)
    return max(8, 32 // min_itemsize)    # 8 for 4B, 16 for 2B, 32 for 1B dtypes


def _choose_lanes(total):
    """Largest lane-dense width that divides `total` (avoids jnp.pad)."""
    for lanes in (4096, 2048, 1024, 512, 256, 128):
        if total % lanes == 0:
            return lanes
    return 1024  # rare: total not a multiple of 128 -> pad to a multiple of 1024


def _choose_tm(rows, lanes, in_dtype, out_dtype):
    """Row-tile: ~4 MiB/buffer, legal packing, >=4 grid steps when possible."""
    min_tm = _sublane_multiple(in_dtype, out_dtype)
    bytes_per_elem = jnp.dtype(in_dtype).itemsize + jnp.dtype(out_dtype).itemsize
    # Double-buffered input + output tiles must fit the buffer budget.
    max_block_elems = max(1, _VMEM_BUFFER_BUDGET // (2 * bytes_per_elem))
    tm = min(rows, max(1, max_block_elems // lanes))
    if tm >= rows:
        return rows                      # full row extent: always a legal block
    tm = max(min_tm, (tm // min_tm) * min_tm)
    # Prefer >= 4 grid steps (pipelining + dual-TC sharding on v7x) if rows allow.
    if rows >= 4 * min_tm:
        cap = -(-((rows + 3) // 4) // min_tm) * min_tm
        tm = min(tm, cap)
    return min(tm, rows)


def scale_forward(x, scale, *, force_pallas=False):
    """Pallas equivalent of Scale.forward: x * scale (scale has shape (1,)).

    Output dtype follows the multiply's type promotion against the f32 scale
    (f32 for f32/bf16/int inputs), matching PyTorch `input * self.scale`.
    """
    scale = jnp.asarray(scale, jnp.float32).reshape(1)
    out_dtype = jnp.promote_types(x.dtype, jnp.float32)
    orig_shape = x.shape
    total = x.size

    # Tiny tensors: pallas_call fixed cost dominates; XLA's fused multiply wins.
    if total == 0 or (not force_pallas and total < _SMALL_INPUT_ELEMS):
        return (x * scale).astype(out_dtype)

    flat = x.reshape(-1)                 # no dtype cast: keep HBM traffic narrow
    lanes = _choose_lanes(total)
    padded_total = pl.cdiv(total, lanes) * lanes
    needs_pad = padded_total != total
    if needs_pad:                        # rare: only when total % 128 != 0
        flat = jnp.pad(flat, (0, padded_total - total))
    rows = padded_total // lanes
    x2d = flat.reshape(rows, lanes)

    tm = _choose_tm(rows, lanes, x.dtype, out_dtype)
    grid = (pl.cdiv(rows, tm),)          # partial last row-block is fine (elementwise)

    out = pl.pallas_call(
        _scale_kernel,
        out_shape=jax.ShapeDtypeStruct((rows, lanes), out_dtype),
        grid=grid,
        in_specs=[
            # (1,) scalar parameter: whole array resident in SMEM across the grid.
            pl.BlockSpec(memory_space=pltpu.MemorySpace.SMEM),
            # Activation tile: lane-dense, pipelined along the row axis.
            pl.BlockSpec((tm, lanes), lambda i: (i, 0)),
        ],
        out_specs=pl.BlockSpec((tm, lanes), lambda i: (i, 0)),
        compiler_params=pltpu.CompilerParams(
            dimension_semantics=("parallel",),
            vmem_limit_bytes=_VMEM_LIMIT_BYTES,
        ),
    )(scale, x2d)

    out = out.reshape(-1)
    if needs_pad:
        out = out[:total]
    return out.reshape(orig_shape)


def init_scale_params(init_value=1.0):
    """Matches nn.Parameter(torch.tensor([init_value], dtype=torch.float32))."""
    return jnp.array([init_value], dtype=jnp.float32)


if __name__ == "__main__":
    key = jax.random.PRNGKey(0)

    # Small shapes consistent with the module: batch=2, channels=4, spatial=16.
    x = jax.random.normal(key, (2, 4, 16, 16), jnp.float32)
    scale = init_scale_params(1.7)

    # Force the Pallas path (this shape is small enough for the JAX fallback).
    y = jax.block_until_ready(scale_forward(x, scale, force_pallas=True))
    assert y.shape == x.shape, (y.shape, x.shape)
    assert y.dtype == jnp.float32
    ref = x * scale
    assert jnp.allclose(y, ref, atol=1e-6, rtol=1e-6)

    # Narrow-dtype path: bf16 input stays bf16 into VMEM, widened in-kernel.
    xb = x.astype(jnp.bfloat16)
    yb = jax.block_until_ready(scale_forward(xb, scale, force_pallas=True))
    refb = xb.astype(jnp.float32) * scale
    assert yb.dtype == jnp.float32
    assert jnp.allclose(yb, refb, atol=1e-5, rtol=1e-5)

    # Small-input plain-JAX fallback path.
    yf = jax.block_until_ready(scale_forward(x, scale))
    assert jnp.allclose(yf, ref, atol=1e-6, rtol=1e-6)

    print("KERNEL_OK")
</pallas_src>

<mosaic_0001>
module attributes {stable_mosaic.version = 11 : i64} {
  func.func @_scale_kernel(%arg0: i32, %arg1: memref<1xf32, #tpu.memory_space<smem>>, %arg2: memref<1x2048xf32, #tpu.memory_space<vmem>>, %arg3: memref<1x2048xf32, #tpu.memory_space<vmem>>) attributes {dimension_semantics = [#tpu.dimension_semantics<parallel>], iteration_bounds = array<i64: 1>, scalar_prefetch = 0 : i64, scratch_operands = 0 : i64, tpu.core_type = #tpu.core_type<tc>, window_params = [{transform_indices = @transform_0, window_bounds = array<i64: 1>}, {transform_indices = @transform_1, window_bounds = array<i64: 1, 2048>}, {transform_indices = @transform_2, window_bounds = array<i64: 1, 2048>}]} {
    %c0 = arith.constant 0 : index
    %c0_0 = arith.constant 0 : index
    %0 = vector.load %arg2[%c0, %c0_0] : memref<1x2048xf32, #tpu.memory_space<vmem>>, vector<1x2048xf32>
    %c0_1 = arith.constant 0 : index
    %1 = memref.load %arg1[%c0_1] : memref<1xf32, #tpu.memory_space<smem>>
    %2 = vector.broadcast %1 : f32 to vector<1x2048xf32>
    %3 = arith.mulf %0, %2 : vector<1x2048xf32>
    %c0_2 = arith.constant 0 : index
    %c0_3 = arith.constant 0 : index
    %4 = vector.load %arg3[%c0_2, %c0_3] : memref<1x2048xf32, #tpu.memory_space<vmem>>, vector<1x2048xf32>
    tpu.vector_store %arg3[%c0_2, %c0_3], %3 {strides = array<i32>} : memref<1x2048xf32, #tpu.memory_space<vmem>>, vector<1x2048xf32>,
    return
  }
  func.func @transform_0(%arg0: i32) -> i32 {
    %c0_i32 = arith.constant 0 : i32
    %c0_i32_0 = arith.constant 0 : i32
    return %c0_i32 : i32
  }
  func.func @transform_1(%arg0: i32) -> (i32, i32) {
    %c0_i32 = arith.constant 0 : i32
    %c0_i32_0 = arith.constant 0 : i32
    return %arg0, %c0_i32 : i32, i32
  }
  func.func @transform_2(%arg0: i32) -> (i32, i32) {
    %c0_i32 = arith.constant 0 : i32
    %c0_i32_0 = arith.constant 0 : i32
    return %arg0, %c0_i32 : i32, i32
  }
}

</mosaic_0001>

<bundles_post_ra>
// kernel: tpu_custom_call.1
= control target key start
LH: loop header
LB: loop body
LE: loop exit
PB: predicated region body
PF: predicated region fallthrough
CT: control target
= control target key end

     0   :  { %8 = vsyncpa [#allocation4], 0  ;;  %s132_s0 = inlined_call_operand.<no memory space> [shape: f32[1], index: 0, kind: input, shape index: {}]   ;;  %s133_s1 = inlined_call_operand.hbm [shape: f32[1,2048], index: 1, kind: input, shape index: {}]   ;;  %s134_s2 = inlined_call_operand.hbm [shape: f32[1,2048], index: 2, kind: output, shape index: {}]  }
   0x1   :  { %9 = vsyncpa [#allocation5], 0  ;;  %s17_s11 = sshll.u32 %s133_s1, 4  ;;  %s106_s12 = smov [#allocation3]   ;;  %s18_s11 = int_to_ptr.hbm [resolvable:$true] %s17_s11 }
   0x2   :  { %s19_s13 = sshll.u32 %s106_s12, 4  ;;  %s20_s13 = int_to_ptr.vmem [resolvable:$true] %s19_s13 }
   0x3   :  { %22 = dma.hbm_to_vmem [thread:$0]  %s18_s11, 256, %s20_s13, [#allocation4]  }
   0x4   :  { %102 = dma.done.wait [#allocation4], 256  }
   0x5   :  { %103 = vsyncadd [#allocation4], 4294967040  ;;  %v30_v0 = vstv %s132_s0  ;;  %s107_s16 = smov [#allocation6]   ;;  %s42_s20 = sshll.u32 %s134_s2, 4  ;;  %v27_v1 = vld [vmem:[#allocation3] sm:$0xff]  ;;  %v28_v2 = vld [vmem:[#allocation3 + $0x8] sm:$0xff]  ;;  %s43_s20 = int_to_ptr.hbm [resolvable:$true] %s42_s20 }
   0x6   :  { %s40_s17 = sshll.u32 %s107_s16, 4  ;;  %v31_v3 = vmul.f32 %v30_v0, %v27_v1  ;;  %v32_v4 = vmul.f32 %v30_v0, %v28_v2  ;;  %s41_s17 = int_to_ptr.vmem [resolvable:$true] %s40_s17 }
   0x8   :  { %33 = vst [vmem:[#allocation6] sm:$0xff] %v31_v3 }
   0x9   :  { %34 = vst [vmem:[#allocation6 + $0x8] sm:$0xff] %v32_v4 }
   0xa   :  { %45 = dma.vmem_to_hbm [thread:$0]  %s41_s17, 256, %s43_s20, [#allocation5]  }
   0xb   :  { %104 = dma.done.wait [#allocation5], 256  }
   0xc   :  { %105 = vsyncadd [#allocation5], 4294967040 }
   0xd   :  { %50 = vsyncpa [#allocation4], 1 }
   0xe   :  { %51 = vsyncpa [#allocation5], 1 }

</bundles_post_ra>
